<compile_context>
chip_gen: v6e
topology: v6e:2x2x1
jax: 0.10.0
libtpu: 0.0.40
codegen_flags: <defaults>
</compile_context>

<pallas_src>
import functools

import jax
import jax.numpy as jnp
from jax.experimental import pallas as pl
from jax.experimental.pallas import tpu as pltpu

NUM_REL = 4
NUM_LAYERS = 3
NEG_SLOPE = 0.01


def _leaky_relu(z):
    return jnp.where(z > 0, z, NEG_SLOPE * z)


def _round_up(x, m):
    return ((x + m - 1) // m) * m


# ----------------------- generation-aware VMEM budget -------------------------
def _vmem_budget_bytes():
    phys = 64 * 1024 * 1024
    try:
        info = pltpu.get_tpu_info()
        phys = int(getattr(info, "vmem_capacity_bytes", phys)) or phys
    except Exception:
        pass
    if phys <= 64 * 1024 * 1024:        # v7x-class: 64 MiB physical per core
        return 40 * 1024 * 1024
    return 96 * 1024 * 1024             # v5e / v6e: 128 MiB physical


# --------------------- tiled per-layer Pallas kernel ---------------------------
def _ecge_layer_kernel(a_ref, y_ref, b_ref, o_ref, *, tk):
    kk = pl.program_id(1)

    @pl.when(kk == 0)
    def _():
        # initialize the resident accumulator block with the broadcast bias
        o_ref[...] = jnp.broadcast_to(b_ref[...], o_ref.shape)

    if y_ref.shape[0] == tk:
        y = y_ref[...]                              # streamed / single-K-tile Y
    else:
        start = pl.multiple_of(kk * tk, tk)         # VMEM-resident Y: slice it
        y = y_ref[pl.ds(start, tk), :]

    o_ref[...] += jnp.dot(a_ref[...], y, preferred_element_type=jnp.float32)

    @pl.when(kk == pl.num_programs(1) - 1)
    def _():
        o_ref[...] = _leaky_relu(o_ref[...])


# ------------------------- fused 3-layer Pallas kernel -------------------------
def _kcge_fused_kernel(a_ref, x_ref, w_ref, b_ref, o_ref):
    # a_ref : [R, N, N] bf16, w_ref : [L, R, D, D] bf16, b_ref : [L, 1, D] f32
    h = x_ref[...]                                  # [N, D] f32
    acc = h
    for layer in range(w_ref.shape[0]):
        hb = h.astype(jnp.bfloat16)
        z = jnp.broadcast_to(b_ref[layer], o_ref.shape)
        for r in range(NUM_REL):
            xw_r = jnp.dot(hb, w_ref[layer, r],
                           preferred_element_type=jnp.float32)      # [N, D]
            z = z + jnp.dot(a_ref[r], xw_r.astype(jnp.bfloat16),
                            preferred_element_type=jnp.float32)
        z = _leaky_relu(z)
        # TODO(synk): F.dropout(p=0.2) is stochastic; eval-mode identity here.
        acc = acc + z
        h = z
    o_ref[...] = acc * 0.25


# ------------------------------- glue (JAX) ------------------------------------
def build_adjacency_cat(edge_index, edge_type, edge_weight, num_nodes):
    """Relation-interleaved normalized adjacency A_int[row, col*R + r] (f32)."""
    row, col = edge_index[0], edge_index[1]
    deg = jnp.zeros((num_nodes,), jnp.float32).at[col].add(
        jnp.ones_like(col, dtype=jnp.float32))
    deg_inv_sqrt = jnp.where(deg > 0, deg ** -0.5, 0.0)
    norm = deg_inv_sqrt[row] * deg_inv_sqrt[col] * edge_weight.astype(jnp.float32)
    a = jnp.zeros((num_nodes, NUM_REL * num_nodes), jnp.float32)
    return a.at[row, col * NUM_REL + edge_type].add(norm)


def _concat_relation_weights(w):
    """[R, D_in, D_out] -> bf16 [D_in, R*D_out] with columns r*D_out + j."""
    r, d_in, d_out = w.shape
    return jnp.transpose(w, (1, 0, 2)).reshape(d_in, r * d_out).astype(jnp.bfloat16)


def _plan_layer(n, k4, d_out, budget_bytes):
    """Pick (tm, tk, n_pad, k_pad, y_resident) for the [n,k4]@[k4,d_out] layer."""
    LANE, SUB = 128, 16
    n_ceil = _round_up(max(n, SUB), SUB)
    k_ceil = _round_up(max(k4, LANE), LANE)
    d_lanes = _round_up(d_out, LANE)

    # Keep the whole Y operand resident in VMEM (single DMA) when it is small.
    y_resident = k_ceil * d_out * 2 <= 4 * 1024 * 1024

    def fits(tm_, tk_):
        a_b = 2 * tm_ * tk_ * 2                       # double-buffered bf16 A
        y_b = k_ceil * d_out * 2 if y_resident else 2 * tk_ * d_out * 2
        o_b = 2 * tm_ * d_lanes * 4                   # f32 output block
        return a_b + y_b + o_b + (1 << 15) <= (budget_bytes * 3) // 4

    # Row tile: big (amortize ~0.35us/step) but leave >=2 row tiles so the
    # "parallel" axis can shard across v7x's two TensorCores.
    tm_target = n_ceil if n_ceil < 2 * SUB else max(SUB, n_ceil // 2)
    tm = 16
    while tm * 2 <= min(tm_target, 1024):
        tm *= 2

    # K tile: as large as the budget allows, up to 4096 bf16 lanes of A.
    tk = 128
    while tk * 2 <= min(4096, k_ceil) and fits(tm, tk * 2):
        tk *= 2
    while not fits(tm, tk) and tm > 16:
        tm //= 2

    n_pad = _round_up(n, tm)
    k_pad = _round_up(k4, tk)
    return tm, tk, n_pad, k_pad, y_resident


# ------------------------------ wrappers ---------------------------------------
def _ecge_conv_tiled(a, y, bias, *, tm, tk, y_resident, vmem_limit):
    n_pad, k_pad = a.shape
    d_out = y.shape[1]
    assert n_pad % tm == 0 and k_pad % tk == 0, "caller must pad to tile multiples"
    bias2d = bias.reshape(1, d_out).astype(jnp.float32)
    if y_resident:
        y_spec = pl.BlockSpec((k_pad, d_out), lambda i, kk: (0, 0))   # one DMA
    else:
        y_spec = pl.BlockSpec((tk, d_out), lambda i, kk: (kk, 0))     # streamed
    kernel = functools.partial(_ecge_layer_kernel, tk=tk)
    return pl.pallas_call(
        kernel,
        out_shape=jax.ShapeDtypeStruct((n_pad, d_out), jnp.float32),
        grid_spec=pltpu.PrefetchScalarGridSpec(
            num_scalar_prefetch=0,
            grid=(n_pad // tm, k_pad // tk),
            in_specs=[
                pl.BlockSpec((tm, tk), lambda i, kk: (i, kk)),        # A tile
                y_spec,                                               # Y
                pl.BlockSpec((1, d_out), lambda i, kk: (0, 0)),       # bias
            ],
            out_specs=pl.BlockSpec((tm, d_out), lambda i, kk: (i, 0)),
        ),
        compiler_params=pltpu.CompilerParams(
            dimension_semantics=("parallel", "arbitrary"),
            vmem_limit_bytes=vmem_limit,
        ),
    )(a, y, bias2d)


def _kcge_tiled(params, a_int_bf16, x, budget):
    n, d = x.shape
    k4 = a_int_bf16.shape[1]
    tm, tk, n_pad, k_pad, y_res = _plan_layer(n, k4, d, budget)
    a = a_int_bf16
    if (n_pad, k_pad) != (n, k4):
        a = jnp.zeros((n_pad, k_pad), jnp.bfloat16).at[:n, :k4].set(a_int_bf16)
    h = x.astype(jnp.float32)
    acc = h
    for w, b in params:
        w_cat = _concat_relation_weights(w)                       # [D, R*D] bf16
        # lane-dense XLA matmul: [N, D] @ [D, R*D] -> [N, R*D]
        xw = jnp.dot(h.astype(jnp.bfloat16), w_cat,
                     preferred_element_type=jnp.float32)
        # interleaved column layout => Y is a free contiguous reshape in HBM
        y = xw.astype(jnp.bfloat16).reshape(n * NUM_REL, d)
        if k_pad != n * NUM_REL:
            y = jnp.zeros((k_pad, d), jnp.bfloat16).at[:n * NUM_REL, :].set(y)
        z = _ecge_conv_tiled(a, y, b, tm=tm, tk=tk, y_resident=y_res,
                             vmem_limit=budget)[:n]
        # TODO(synk): F.dropout(p=0.2) eval-mode identity.
        acc = acc + z
        h = z
    return acc * 0.25


def _kcge_fused(params, a_int_bf16, x, vmem_limit):
    n, d = x.shape
    # [N, R*N] interleaved -> [R, N, N] per-relation blocks (cheap, small graphs)
    a3 = a_int_bf16.reshape(n, n, NUM_REL).transpose(2, 0, 1)
    w_all = jnp.stack([w for w, _ in params]).astype(jnp.bfloat16)    # [L,R,D,D]
    b_all = jnp.stack([b for _, b in params]).astype(jnp.float32)
    b_all = b_all.reshape(len(params), 1, d)
    return pl.pallas_call(
        _kcge_fused_kernel,
        out_shape=jax.ShapeDtypeStruct((n, d), jnp.float32),
        compiler_params=pltpu.CompilerParams(vmem_limit_bytes=vmem_limit),
    )(a3, x.astype(jnp.float32), w_all, b_all)


def kcge_forward(params, x, edge_index, edge_type, edge_attr, fuse=None):
    n, d = x.shape
    budget = _vmem_budget_bytes()
    a_int = build_adjacency_cat(edge_index, edge_type, edge_attr, n)
    a_bf16 = a_int.astype(jnp.bfloat16)    # scatter/normalize in f32, cast once
    if fuse is None:
        # Fused path whenever the resident working set (A bf16 + activations +
        # per-layer temporaries + weights) fits well under the scoped budget.
        fused_bytes = (2 * NUM_REL * n * n
                       + 48 * n * d
                       + 2 * NUM_LAYERS * NUM_REL * d * d
                       + (1 << 16))
        fuse = fused_bytes <= budget // 2
    if fuse:
        return _kcge_fused(params, a_bf16, x, budget)
    return _kcge_tiled(params, a_bf16, x, budget)


# --------------------------- pure-JAX references --------------------------------
def _spec_conv_ref(x, edge_index, edge_type, edge_weight, w, b):
    """Mirrors the PyTorch ECGEConv edge-scatter formulation (f32)."""
    row, col = edge_index[0], edge_index[1]
    n = x.shape[0]
    deg = jnp.zeros((n,), x.dtype).at[col].add(jnp.ones_like(col, dtype=x.dtype))
    deg_inv_sqrt = jnp.where(deg > 0, deg ** -0.5, 0.0)
    norm = deg_inv_sqrt[row] * deg_inv_sqrt[col] * edge_weight
    x_j = jnp.einsum("ed,edf->ef", x[col], w[edge_type])
    x_j = norm[:, None] * x_j
    out = jnp.zeros((n, w.shape[2]), x.dtype).at[row].add(x_j)
    out = out + b[None, :]
    return _leaky_relu(out)


def kcge_spec_ref(params, x, edge_index, edge_type, edge_attr):
    z1 = _spec_conv_ref(x, edge_index, edge_type, edge_attr, *params[0])
    z2 = _spec_conv_ref(z1, edge_index, edge_type, edge_attr, *params[1])
    z3 = _spec_conv_ref(z2, edge_index, edge_type, edge_attr, *params[2])
    return (x + z1 + z2 + z3) / 4.0


def kcge_matched_ref(params, x, edge_index, edge_type, edge_attr):
    """Plain-jnp mirror of the kernel math (same bf16 casts, f32 accumulation)."""
    n, d = x.shape
    a = build_adjacency_cat(edge_index, edge_type, edge_attr, n).astype(jnp.bfloat16)
    h = x.astype(jnp.float32)
    acc = h
    for w, b in params:
        xw = jnp.dot(h.astype(jnp.bfloat16), _concat_relation_weights(w),
                     preferred_element_type=jnp.float32)
        y = xw.astype(jnp.bfloat16).reshape(n * NUM_REL, d)
        z = jnp.dot(a, y, preferred_element_type=jnp.float32) + b[None, :]
        z = _leaky_relu(z)
        acc = acc + z
        h = z
    return acc * 0.25


# ------------------------------- init helpers -----------------------------------
def xavier_uniform(key, shape, dtype=jnp.float32):
    fan_in, fan_out = shape[-2], shape[-1]
    limit = (6.0 / (fan_in + fan_out)) ** 0.5
    return jax.random.uniform(key, shape, dtype, minval=-limit, maxval=limit)


def init_kcge_params(key, embedding_dim):
    params = []
    for k in jax.random.split(key, NUM_LAYERS):
        w = xavier_uniform(k, (NUM_REL, embedding_dim, embedding_dim))
        b = jnp.zeros((embedding_dim,), jnp.float32)
        params.append((w, b))
    return params


def make_inputs(key, num_nodes, embedding_dim, num_edges):
    k_x, k_src, k_dst, k_type, k_w = jax.random.split(key, 5)
    x = jax.random.normal(k_x, (num_nodes, embedding_dim), jnp.float32)
    row = jax.random.randint(k_src, (num_edges,), 0, num_nodes, jnp.int32)
    col = jax.random.randint(k_dst, (num_edges,), 0, num_nodes, jnp.int32)
    edge_index = jnp.stack([row, col], axis=0)
    edge_type = jax.random.randint(k_type, (num_edges,), 0, NUM_REL, jnp.int32)
    edge_attr = jax.random.uniform(k_w, (num_edges,), jnp.float32, 0.5, 1.5)
    return x, edge_index, edge_type, edge_attr


# ----------------------------------- main ----------------------------------------
if __name__ == "__main__":
    root = jax.random.PRNGKey(0)
    k_small, k_large, k_odd = jax.random.split(root, 3)

    # --- small config (module's intended scale): fused 3-layer kernel -----------
    kp, ki = jax.random.split(k_small)
    params = init_kcge_params(kp, 32)
    x, ei, et, ew = make_inputs(ki, num_nodes=16, embedding_dim=32, num_edges=64)
    z_fused = jax.block_until_ready(kcge_forward(params, x, ei, et, ew))
    assert z_fused.shape == (16, 32)
    assert jnp.allclose(z_fused, kcge_matched_ref(params, x, ei, et, ew),
                        atol=2e-2, rtol=2e-2), "fused != matched ref"
    assert jnp.allclose(z_fused, kcge_spec_ref(params, x, ei, et, ew),
                        atol=1e-1, rtol=1e-1), "fused != f32 spec ref"

    # --- larger config: exercises the row/K-tiled per-layer kernel --------------
    kp2, ki2 = jax.random.split(k_large)
    params2 = init_kcge_params(kp2, 32)
    x2, ei2, et2, ew2 = make_inputs(ki2, num_nodes=512, embedding_dim=32,
                                    num_edges=4096)
    z_tiled = jax.block_until_ready(
        kcge_forward(params2, x2, ei2, et2, ew2, fuse=False))
    assert z_tiled.shape == (512, 32)
    assert jnp.allclose(z_tiled, kcge_matched_ref(params2, x2, ei2, et2, ew2),
                        atol=2e-2, rtol=2e-2), "tiled != matched ref"
    assert jnp.allclose(z_tiled, kcge_spec_ref(params2, x2, ei2, et2, ew2),
                        atol=1e-1, rtol=1e-1), "tiled != f32 spec ref"

    # --- awkward (non power-of-two) size: exercises the zero-padded tiles -------
    kp3, ki3 = jax.random.split(k_odd)
    params3 = init_kcge_params(kp3, 32)
    x3, ei3, et3, ew3 = make_inputs(ki3, num_nodes=100, embedding_dim=32,
                                    num_edges=300)
    z_pad = jax.block_until_ready(
        kcge_forward(params3, x3, ei3, et3, ew3, fuse=False))
    assert z_pad.shape == (100, 32)
    assert jnp.allclose(z_pad, kcge_matched_ref(params3, x3, ei3, et3, ew3),
                        atol=2e-2, rtol=2e-2), "padded tiled != matched ref"

    # --- directly exercise the resident-Y / multi-K-tile (pl.ds) kernel path ----
    a2 = build_adjacency_cat(ei2, et2, ew2, 512).astype(jnp.bfloat16)
    w0, b0 = params2[0]
    xw0 = jnp.dot(x2.astype(jnp.bfloat16), _concat_relation_weights(w0),
                  preferred_element_type=jnp.float32)
    y0 = xw0.astype(jnp.bfloat16).reshape(512 * NUM_REL, 32)
    z_dyn = jax.block_until_ready(
        _ecge_conv_tiled(a2, y0, b0, tm=128, tk=512, y_resident=True,
                         vmem_limit=_vmem_budget_bytes()))
    z_dyn_ref = _leaky_relu(
        jnp.dot(a2, y0, preferred_element_type=jnp.float32) + b0[None, :])
    assert jnp.allclose(z_dyn, z_dyn_ref, atol=2e-2, rtol=2e-2), \
        "resident-Y multi-K path mismatch"

    print("KERNEL_OK")
</pallas_src>

<mosaic_0001>
module attributes {stable_mosaic.version = 11 : i64} {
  func.func @_kcge_fused_kernel(%arg0: memref<4x16x16xbf16, #tpu.memory_space<vmem>>, %arg1: memref<16x32xf32, #tpu.memory_space<vmem>>, %arg2: memref<3x4x32x32xbf16, #tpu.memory_space<vmem>>, %arg3: memref<3x1x32xf32, #tpu.memory_space<vmem>>, %arg4: memref<16x32xf32, #tpu.memory_space<vmem>>) attributes {dimension_semantics = [], scalar_prefetch = 0 : i64, scratch_operands = 0 : i64, tpu.core_type = #tpu.core_type<tc>} {
    %c0 = arith.constant 0 : index
    %c0_0 = arith.constant 0 : index
    %0 = vector.load %arg1[%c0, %c0_0] : memref<16x32xf32, #tpu.memory_space<vmem>>, vector<16x32xf32>
    %1 = arith.truncf %0 : vector<16x32xf32> to vector<16x32xbf16>
    %c0_1 = arith.constant 0 : index
    %c0_2 = arith.constant 0 : index
    %c0_3 = arith.constant 0 : index
    %2 = vector.load %arg3[%c0_1, %c0_2, %c0_3] : memref<3x1x32xf32, #tpu.memory_space<vmem>>, vector<1x1x32xf32>
    %3 = vector.shape_cast %2 : vector<1x1x32xf32> to vector<1x32xf32>
    %4 = vector.shape_cast %3 : vector<1x32xf32> to vector<1x32xf32>
    %5 = vector.broadcast %4 : vector<1x32xf32> to vector<16x32xf32>
    %c0_4 = arith.constant 0 : index
    %c0_5 = arith.constant 0 : index
    %c0_6 = arith.constant 0 : index
    %c0_7 = arith.constant 0 : index
    %6 = vector.load %arg2[%c0_4, %c0_5, %c0_6, %c0_7] : memref<3x4x32x32xbf16, #tpu.memory_space<vmem>>, vector<1x1x32x32xbf16>
    %7 = vector.shape_cast %6 : vector<1x1x32x32xbf16> to vector<32x32xbf16>
    %cst = arith.constant dense<0.000000e+00> : vector<16x32xf32>
    %8 = tpu.matmul %1, %7, %cst {dimension_numbers = #tpu.dot_dimension_numbers<[1], [0], [0], [1], [0, 0, 1, 1], [], []>} : vector<16x32xbf16>, vector<32x32xbf16>, vector<16x32xf32> -> vector<16x32xf32>
    %c0_8 = arith.constant 0 : index
    %c0_9 = arith.constant 0 : index
    %c0_10 = arith.constant 0 : index
    %9 = vector.load %arg0[%c0_8, %c0_9, %c0_10] : memref<4x16x16xbf16, #tpu.memory_space<vmem>>, vector<1x16x16xbf16>
    %10 = vector.shape_cast %9 : vector<1x16x16xbf16> to vector<16x16xbf16>
    %11 = arith.truncf %8 : vector<16x32xf32> to vector<16x32xbf16>
    %cst_11 = arith.constant dense<0.000000e+00> : vector<16x32xf32>
    %12 = tpu.matmul %10, %11, %cst_11 {dimension_numbers = #tpu.dot_dimension_numbers<[1], [0], [0], [1], [0, 0, 1, 1], [], []>} : vector<16x16xbf16>, vector<16x32xbf16>, vector<16x32xf32> -> vector<16x32xf32>
    %13 = arith.addf %5, %12 : vector<16x32xf32>
    %c0_12 = arith.constant 0 : index
    %c1 = arith.constant 1 : index
    %c0_13 = arith.constant 0 : index
    %c0_14 = arith.constant 0 : index
    %14 = vector.load %arg2[%c0_12, %c1, %c0_13, %c0_14] : memref<3x4x32x32xbf16, #tpu.memory_space<vmem>>, vector<1x1x32x32xbf16>
    %15 = vector.shape_cast %14 : vector<1x1x32x32xbf16> to vector<32x32xbf16>
    %cst_15 = arith.constant dense<0.000000e+00> : vector<16x32xf32>
    %16 = tpu.matmul %1, %15, %cst_15 {dimension_numbers = #tpu.dot_dimension_numbers<[1], [0], [0], [1], [0, 0, 1, 1], [], []>} : vector<16x32xbf16>, vector<32x32xbf16>, vector<16x32xf32> -> vector<16x32xf32>
    %c1_16 = arith.constant 1 : index
    %c0_17 = arith.constant 0 : index
    %c0_18 = arith.constant 0 : index
    %17 = vector.load %arg0[%c1_16, %c0_17, %c0_18] : memref<4x16x16xbf16, #tpu.memory_space<vmem>>, vector<1x16x16xbf16>
    %18 = vector.shape_cast %17 : vector<1x16x16xbf16> to vector<16x16xbf16>
    %19 = arith.truncf %16 : vector<16x32xf32> to vector<16x32xbf16>
    %cst_19 = arith.constant dense<0.000000e+00> : vector<16x32xf32>
    %20 = tpu.matmul %18, %19, %cst_19 {dimension_numbers = #tpu.dot_dimension_numbers<[1], [0], [0], [1], [0, 0, 1, 1], [], []>} : vector<16x16xbf16>, vector<16x32xbf16>, vector<16x32xf32> -> vector<16x32xf32>
    %21 = arith.addf %13, %20 : vector<16x32xf32>
    %c0_20 = arith.constant 0 : index
    %c2 = arith.constant 2 : index
    %c0_21 = arith.constant 0 : index
    %c0_22 = arith.constant 0 : index
    %22 = vector.load %arg2[%c0_20, %c2, %c0_21, %c0_22] : memref<3x4x32x32xbf16, #tpu.memory_space<vmem>>, vector<1x1x32x32xbf16>
    %23 = vector.shape_cast %22 : vector<1x1x32x32xbf16> to vector<32x32xbf16>
    %cst_23 = arith.constant dense<0.000000e+00> : vector<16x32xf32>
    %24 = tpu.matmul %1, %23, %cst_23 {dimension_numbers = #tpu.dot_dimension_numbers<[1], [0], [0], [1], [0, 0, 1, 1], [], []>} : vector<16x32xbf16>, vector<32x32xbf16>, vector<16x32xf32> -> vector<16x32xf32>
    %c2_24 = arith.constant 2 : index
    %c0_25 = arith.constant 0 : index
    %c0_26 = arith.constant 0 : index
    %25 = vector.load %arg0[%c2_24, %c0_25, %c0_26] : memref<4x16x16xbf16, #tpu.memory_space<vmem>>, vector<1x16x16xbf16>
    %26 = vector.shape_cast %25 : vector<1x16x16xbf16> to vector<16x16xbf16>
    %27 = arith.truncf %24 : vector<16x32xf32> to vector<16x32xbf16>
    %cst_27 = arith.constant dense<0.000000e+00> : vector<16x32xf32>
    %28 = tpu.matmul %26, %27, %cst_27 {dimension_numbers = #tpu.dot_dimension_numbers<[1], [0], [0], [1], [0, 0, 1, 1], [], []>} : vector<16x16xbf16>, vector<16x32xbf16>, vector<16x32xf32> -> vector<16x32xf32>
    %29 = arith.addf %21, %28 : vector<16x32xf32>
    %c0_28 = arith.constant 0 : index
    %c3 = arith.constant 3 : index
    %c0_29 = arith.constant 0 : index
    %c0_30 = arith.constant 0 : index
    %30 = vector.load %arg2[%c0_28, %c3, %c0_29, %c0_30] : memref<3x4x32x32xbf16, #tpu.memory_space<vmem>>, vector<1x1x32x32xbf16>
    %31 = vector.shape_cast %30 : vector<1x1x32x32xbf16> to vector<32x32xbf16>
    %cst_31 = arith.constant dense<0.000000e+00> : vector<16x32xf32>
    %32 = tpu.matmul %1, %31, %cst_31 {dimension_numbers = #tpu.dot_dimension_numbers<[1], [0], [0], [1], [0, 0, 1, 1], [], []>} : vector<16x32xbf16>, vector<32x32xbf16>, vector<16x32xf32> -> vector<16x32xf32>
    %c3_32 = arith.constant 3 : index
    %c0_33 = arith.constant 0 : index
    %c0_34 = arith.constant 0 : index
    %33 = vector.load %arg0[%c3_32, %c0_33, %c0_34] : memref<4x16x16xbf16, #tpu.memory_space<vmem>>, vector<1x16x16xbf16>
    %34 = vector.shape_cast %33 : vector<1x16x16xbf16> to vector<16x16xbf16>
    %35 = arith.truncf %32 : vector<16x32xf32> to vector<16x32xbf16>
    %cst_35 = arith.constant dense<0.000000e+00> : vector<16x32xf32>
    %36 = tpu.matmul %34, %35, %cst_35 {dimension_numbers = #tpu.dot_dimension_numbers<[1], [0], [0], [1], [0, 0, 1, 1], [], []>} : vector<16x16xbf16>, vector<16x32xbf16>, vector<16x32xf32> -> vector<16x32xf32>
    %37 = arith.addf %29, %36 : vector<16x32xf32>
    %cst_36 = arith.constant 0.000000e+00 : f32
    %38 = vector.broadcast %cst_36 : f32 to vector<16x32xf32>
    %39 = arith.cmpf ogt, %37, %38 : vector<16x32xf32>
    %cst_37 = arith.constant 0.00999999977 : f32
    %40 = vector.broadcast %cst_37 : f32 to vector<16x32xf32>
    %41 = arith.mulf %40, %37 : vector<16x32xf32>
    %42 = arith.select %39, %37, %41 : vector<16x32xi1>, vector<16x32xf32>
    %43 = arith.addf %0, %42 : vector<16x32xf32>
    %44 = arith.truncf %42 : vector<16x32xf32> to vector<16x32xbf16>
    %c1_38 = arith.constant 1 : index
    %c0_39 = arith.constant 0 : index
    %c0_40 = arith.constant 0 : index
    %45 = vector.load %arg3[%c1_38, %c0_39, %c0_40] : memref<3x1x32xf32, #tpu.memory_space<vmem>>, vector<1x1x32xf32>
    %46 = vector.shape_cast %45 : vector<1x1x32xf32> to vector<1x32xf32>
    %47 = vector.shape_cast %46 : vector<1x32xf32> to vector<1x32xf32>
    %48 = vector.broadcast %47 : vector<1x32xf32> to vector<16x32xf32>
    %c1_41 = arith.constant 1 : index
    %c0_42 = arith.constant 0 : index
    %c0_43 = arith.constant 0 : index
    %c0_44 = arith.constant 0 : index
    %49 = vector.load %arg2[%c1_41, %c0_42, %c0_43, %c0_44] : memref<3x4x32x32xbf16, #tpu.memory_space<vmem>>, vector<1x1x32x32xbf16>
    %50 = vector.shape_cast %49 : vector<1x1x32x32xbf16> to vector<32x32xbf16>
    %cst_45 = arith.constant dense<0.000000e+00> : vector<16x32xf32>
    %51 = tpu.matmul %44, %50, %cst_45 {dimension_numbers = #tpu.dot_dimension_numbers<[1], [0], [0], [1], [0, 0, 1, 1], [], []>} : vector<16x32xbf16>, vector<32x32xbf16>, vector<16x32xf32> -> vector<16x32xf32>
    %c0_46 = arith.constant 0 : index
    %c0_47 = arith.constant 0 : index
    %c0_48 = arith.constant 0 : index
    %52 = vector.load %arg0[%c0_46, %c0_47, %c0_48] : memref<4x16x16xbf16, #tpu.memory_space<vmem>>, vector<1x16x16xbf16>
    %53 = vector.shape_cast %52 : vector<1x16x16xbf16> to vector<16x16xbf16>
    %54 = arith.truncf %51 : vector<16x32xf32> to vector<16x32xbf16>
    %cst_49 = arith.constant dense<0.000000e+00> : vector<16x32xf32>
    %55 = tpu.matmul %53, %54, %cst_49 {dimension_numbers = #tpu.dot_dimension_numbers<[1], [0], [0], [1], [0, 0, 1, 1], [], []>} : vector<16x16xbf16>, vector<16x32xbf16>, vector<16x32xf32> -> vector<16x32xf32>
    %56 = arith.addf %48, %55 : vector<16x32xf32>
    %c1_50 = arith.constant 1 : index
    %c1_51 = arith.constant 1 : index
    %c0_52 = arith.constant 0 : index
    %c0_53 = arith.constant 0 : index
    %57 = vector.load %arg2[%c1_50, %c1_51, %c0_52, %c0_53] : memref<3x4x32x32xbf16, #tpu.memory_space<vmem>>, vector<1x1x32x32xbf16>
    %58 = vector.shape_cast %57 : vector<1x1x32x32xbf16> to vector<32x32xbf16>
    %cst_54 = arith.constant dense<0.000000e+00> : vector<16x32xf32>
    %59 = tpu.matmul %44, %58, %cst_54 {dimension_numbers = #tpu.dot_dimension_numbers<[1], [0], [0], [1], [0, 0, 1, 1], [], []>} : vector<16x32xbf16>, vector<32x32xbf16>, vector<16x32xf32> -> vector<16x32xf32>
    %c1_55 = arith.constant 1 : index
    %c0_56 = arith.constant 0 : index
    %c0_57 = arith.constant 0 : index
    %60 = vector.load %arg0[%c1_55, %c0_56, %c0_57] : memref<4x16x16xbf16, #tpu.memory_space<vmem>>, vector<1x16x16xbf16>
    %61 = vector.shape_cast %60 : vector<1x16x16xbf16> to vector<16x16xbf16>
    %62 = arith.truncf %59 : vector<16x32xf32> to vector<16x32xbf16>
    %cst_58 = arith.constant dense<0.000000e+00> : vector<16x32xf32>
    %63 = tpu.matmul %61, %62, %cst_58 {dimension_numbers = #tpu.dot_dimension_numbers<[1], [0], [0], [1], [0, 0, 1, 1], [], []>} : vector<16x16xbf16>, vector<16x32xbf16>, vector<16x32xf32> -> vector<16x32xf32>
    %64 = arith.addf %56, %63 : vector<16x32xf32>
    %c1_59 = arith.constant 1 : index
    %c2_60 = arith.constant 2 : index
    %c0_61 = arith.constant 0 : index
    %c0_62 = arith.constant 0 : index
    %65 = vector.load %arg2[%c1_59, %c2_60, %c0_61, %c0_62] : memref<3x4x32x32xbf16, #tpu.memory_space<vmem>>, vector<1x1x32x32xbf16>
    %66 = vector.shape_cast %65 : vector<1x1x32x32xbf16> to vector<32x32xbf16>
    %cst_63 = arith.constant dense<0.000000e+00> : vector<16x32xf32>
    %67 = tpu.matmul %44, %66, %cst_63 {dimension_numbers = #tpu.dot_dimension_numbers<[1], [0], [0], [1], [0, 0, 1, 1], [], []>} : vector<16x32xbf16>, vector<32x32xbf16>, vector<16x32xf32> -> vector<16x32xf32>
    %c2_64 = arith.constant 2 : index
    %c0_65 = arith.constant 0 : index
    %c0_66 = arith.constant 0 : index
    %68 = vector.load %arg0[%c2_64, %c0_65, %c0_66] : memref<4x16x16xbf16, #tpu.memory_space<vmem>>, vector<1x16x16xbf16>
    %69 = vector.shape_cast %68 : vector<1x16x16xbf16> to vector<16x16xbf16>
    %70 = arith.truncf %67 : vector<16x32xf32> to vector<16x32xbf16>
    %cst_67 = arith.constant dense<0.000000e+00> : vector<16x32xf32>
    %71 = tpu.matmul %69, %70, %cst_67 {dimension_numbers = #tpu.dot_dimension_numbers<[1], [0], [0], [1], [0, 0, 1, 1], [], []>} : vector<16x16xbf16>, vector<16x32xbf16>, vector<16x32xf32> -> vector<16x32xf32>
    %72 = arith.addf %64, %71 : vector<16x32xf32>
    %c1_68 = arith.constant 1 : index
    %c3_69 = arith.constant 3 : index
    %c0_70 = arith.constant 0 : index
    %c0_71 = arith.constant 0 : index
    %73 = vector.load %arg2[%c1_68, %c3_69, %c0_70, %c0_71] : memref<3x4x32x32xbf16, #tpu.memory_space<vmem>>, vector<1x1x32x32xbf16>
    %74 = vector.shape_cast %73 : vector<1x1x32x32xbf16> to vector<32x32xbf16>
    %cst_72 = arith.constant dense<0.000000e+00> : vector<16x32xf32>
    %75 = tpu.matmul %44, %74, %cst_72 {dimension_numbers = #tpu.dot_dimension_numbers<[1], [0], [0], [1], [0, 0, 1, 1], [], []>} : vector<16x32xbf16>, vector<32x32xbf16>, vector<16x32xf32> -> vector<16x32xf32>
    %c3_73 = arith.constant 3 : index
    %c0_74 = arith.constant 0 : index
    %c0_75 = arith.constant 0 : index
    %76 = vector.load %arg0[%c3_73, %c0_74, %c0_75] : memref<4x16x16xbf16, #tpu.memory_space<vmem>>, vector<1x16x16xbf16>
    %77 = vector.shape_cast %76 : vector<1x16x16xbf16> to vector<16x16xbf16>
    %78 = arith.truncf %75 : vector<16x32xf32> to vector<16x32xbf16>
    %cst_76 = arith.constant dense<0.000000e+00> : vector<16x32xf32>
    %79 = tpu.matmul %77, %78, %cst_76 {dimension_numbers = #tpu.dot_dimension_numbers<[1], [0], [0], [1], [0, 0, 1, 1], [], []>} : vector<16x16xbf16>, vector<16x32xbf16>, vector<16x32xf32> -> vector<16x32xf32>
    %80 = arith.addf %72, %79 : vector<16x32xf32>
    %cst_77 = arith.constant 0.000000e+00 : f32
    %81 = vector.broadcast %cst_77 : f32 to vector<16x32xf32>
    %82 = arith.cmpf ogt, %80, %81 : vector<16x32xf32>
    %cst_78 = arith.constant 0.00999999977 : f32
    %83 = vector.broadcast %cst_78 : f32 to vector<16x32xf32>
    %84 = arith.mulf %83, %80 : vector<16x32xf32>
    %85 = arith.select %82, %80, %84 : vector<16x32xi1>, vector<16x32xf32>
    %86 = arith.addf %43, %85 : vector<16x32xf32>
    %87 = arith.truncf %85 : vector<16x32xf32> to vector<16x32xbf16>
    %c2_79 = arith.constant 2 : index
    %c0_80 = arith.constant 0 : index
    %c0_81 = arith.constant 0 : index
    %88 = vector.load %arg3[%c2_79, %c0_80, %c0_81] : memref<3x1x32xf32, #tpu.memory_space<vmem>>, vector<1x1x32xf32>
    %89 = vector.shape_cast %88 : vector<1x1x32xf32> to vector<1x32xf32>
    %90 = vector.shape_cast %89 : vector<1x32xf32> to vector<1x32xf32>
    %91 = vector.broadcast %90 : vector<1x32xf32> to vector<16x32xf32>
    %c2_82 = arith.constant 2 : index
    %c0_83 = arith.constant 0 : index
    %c0_84 = arith.constant 0 : index
    %c0_85 = arith.constant 0 : index
    %92 = vector.load %arg2[%c2_82, %c0_83, %c0_84, %c0_85] : memref<3x4x32x32xbf16, #tpu.memory_space<vmem>>, vector<1x1x32x32xbf16>
    %93 = vector.shape_cast %92 : vector<1x1x32x32xbf16> to vector<32x32xbf16>
    %cst_86 = arith.constant dense<0.000000e+00> : vector<16x32xf32>
    %94 = tpu.matmul %87, %93, %cst_86 {dimension_numbers = #tpu.dot_dimension_numbers<[1], [0], [0], [1], [0, 0, 1, 1], [], []>} : vector<16x32xbf16>, vector<32x32xbf16>, vector<16x32xf32> -> vector<16x32xf32>
    %c0_87 = arith.constant 0 : index
    %c0_88 = arith.constant 0 : index
    %c0_89 = arith.constant 0 : index
    %95 = vector.load %arg0[%c0_87, %c0_88, %c0_89] : memref<4x16x16xbf16, #tpu.memory_space<vmem>>, vector<1x16x16xbf16>
    %96 = vector.shape_cast %95 : vector<1x16x16xbf16> to vector<16x16xbf16>
    %97 = arith.truncf %94 : vector<16x32xf32> to vector<16x32xbf16>
    %cst_90 = arith.constant dense<0.000000e+00> : vector<16x32xf32>
    %98 = tpu.matmul %96, %97, %cst_90 {dimension_numbers = #tpu.dot_dimension_numbers<[1], [0], [0], [1], [0, 0, 1, 1], [], []>} : vector<16x16xbf16>, vector<16x32xbf16>, vector<16x32xf32> -> vector<16x32xf32>
    %99 = arith.addf %91, %98 : vector<16x32xf32>
    %c2_91 = arith.constant 2 : index
    %c1_92 = arith.constant 1 : index
    %c0_93 = arith.constant 0 : index
    %c0_94 = arith.constant 0 : index
    %100 = vector.load %arg2[%c2_91, %c1_92, %c0_93, %c0_94] : memref<3x4x32x32xbf16, #tpu.memory_space<vmem>>, vector<1x1x32x32xbf16>
    %101 = vector.shape_cast %100 : vector<1x1x32x32xbf16> to vector<32x32xbf16>
    %cst_95 = arith.constant dense<0.000000e+00> : vector<16x32xf32>
    %102 = tpu.matmul %87, %101, %cst_95 {dimension_numbers = #tpu.dot_dimension_numbers<[1], [0], [0], [1], [0, 0, 1, 1], [], []>} : vector<16x32xbf16>, vector<32x32xbf16>, vector<16x32xf32> -> vector<16x32xf32>
    %c1_96 = arith.constant 1 : index
    %c0_97 = arith.constant 0 : index
    %c0_98 = arith.constant 0 : index
    %103 = vector.load %arg0[%c1_96, %c0_97, %c0_98] : memref<4x16x16xbf16, #tpu.memory_space<vmem>>, vector<1x16x16xbf16>
    %104 = vector.shape_cast %103 : vector<1x16x16xbf16> to vector<16x16xbf16>
    %105 = arith.truncf %102 : vector<16x32xf32> to vector<16x32xbf16>
    %cst_99 = arith.constant dense<0.000000e+00> : vector<16x32xf32>
    %106 = tpu.matmul %104, %105, %cst_99 {dimension_numbers = #tpu.dot_dimension_numbers<[1], [0], [0], [1], [0, 0, 1, 1], [], []>} : vector<16x16xbf16>, vector<16x32xbf16>, vector<16x32xf32> -> vector<16x32xf32>
    %107 = arith.addf %99, %106 : vector<16x32xf32>
    %c2_100 = arith.constant 2 : index
    %c2_101 = arith.constant 2 : index
    %c0_102 = arith.constant 0 : index
    %c0_103 = arith.constant 0 : index
    %108 = vector.load %arg2[%c2_100, %c2_101, %c0_102, %c0_103] : memref<3x4x32x32xbf16, #tpu.memory_space<vmem>>, vector<1x1x32x32xbf16>
    %109 = vector.shape_cast %108 : vector<1x1x32x32xbf16> to vector<32x32xbf16>
    %cst_104 = arith.constant dense<0.000000e+00> : vector<16x32xf32>
    %110 = tpu.matmul %87, %109, %cst_104 {dimension_numbers = #tpu.dot_dimension_numbers<[1], [0], [0], [1], [0, 0, 1, 1], [], []>} : vector<16x32xbf16>, vector<32x32xbf16>, vector<16x32xf32> -> vector<16x32xf32>
    %c2_105 = arith.constant 2 : index
    %c0_106 = arith.constant 0 : index
    %c0_107 = arith.constant 0 : index
    %111 = vector.load %arg0[%c2_105, %c0_106, %c0_107] : memref<4x16x16xbf16, #tpu.memory_space<vmem>>, vector<1x16x16xbf16>
    %112 = vector.shape_cast %111 : vector<1x16x16xbf16> to vector<16x16xbf16>
    %113 = arith.truncf %110 : vector<16x32xf32> to vector<16x32xbf16>
    %cst_108 = arith.constant dense<0.000000e+00> : vector<16x32xf32>
    %114 = tpu.matmul %112, %113, %cst_108 {dimension_numbers = #tpu.dot_dimension_numbers<[1], [0], [0], [1], [0, 0, 1, 1], [], []>} : vector<16x16xbf16>, vector<16x32xbf16>, vector<16x32xf32> -> vector<16x32xf32>
    %115 = arith.addf %107, %114 : vector<16x32xf32>
    %c2_109 = arith.constant 2 : index
    %c3_110 = arith.constant 3 : index
    %c0_111 = arith.constant 0 : index
    %c0_112 = arith.constant 0 : index
    %116 = vector.load %arg2[%c2_109, %c3_110, %c0_111, %c0_112] : memref<3x4x32x32xbf16, #tpu.memory_space<vmem>>, vector<1x1x32x32xbf16>
    %117 = vector.shape_cast %116 : vector<1x1x32x32xbf16> to vector<32x32xbf16>
    %cst_113 = arith.constant dense<0.000000e+00> : vector<16x32xf32>
    %118 = tpu.matmul %87, %117, %cst_113 {dimension_numbers = #tpu.dot_dimension_numbers<[1], [0], [0], [1], [0, 0, 1, 1], [], []>} : vector<16x32xbf16>, vector<32x32xbf16>, vector<16x32xf32> -> vector<16x32xf32>
    %c3_114 = arith.constant 3 : index
    %c0_115 = arith.constant 0 : index
    %c0_116 = arith.constant 0 : index
    %119 = vector.load %arg0[%c3_114, %c0_115, %c0_116] : memref<4x16x16xbf16, #tpu.memory_space<vmem>>, vector<1x16x16xbf16>
    %120 = vector.shape_cast %119 : vector<1x16x16xbf16> to vector<16x16xbf16>
    %121 = arith.truncf %118 : vector<16x32xf32> to vector<16x32xbf16>
    %cst_117 = arith.constant dense<0.000000e+00> : vector<16x32xf32>
    %122 = tpu.matmul %120, %121, %cst_117 {dimension_numbers = #tpu.dot_dimension_numbers<[1], [0], [0], [1], [0, 0, 1, 1], [], []>} : vector<16x16xbf16>, vector<16x32xbf16>, vector<16x32xf32> -> vector<16x32xf32>
    %123 = arith.addf %115, %122 : vector<16x32xf32>
    %cst_118 = arith.constant 0.000000e+00 : f32
    %124 = vector.broadcast %cst_118 : f32 to vector<16x32xf32>
    %125 = arith.cmpf ogt, %123, %124 : vector<16x32xf32>
    %cst_119 = arith.constant 0.00999999977 : f32
    %126 = vector.broadcast %cst_119 : f32 to vector<16x32xf32>
    %127 = arith.mulf %126, %123 : vector<16x32xf32>
    %128 = arith.select %125, %123, %127 : vector<16x32xi1>, vector<16x32xf32>
    %129 = arith.addf %86, %128 : vector<16x32xf32>
    %cst_120 = arith.constant 2.500000e-01 : f32
    %130 = vector.broadcast %cst_120 : f32 to vector<16x32xf32>
    %131 = arith.mulf %129, %130 : vector<16x32xf32>
    %c0_121 = arith.constant 0 : index
    %c0_122 = arith.constant 0 : index
    %132 = vector.load %arg4[%c0_121, %c0_122] : memref<16x32xf32, #tpu.memory_space<vmem>>, vector<16x32xf32>
    tpu.vector_store %arg4[%c0_121, %c0_122], %131 {strides = array<i32>} : memref<16x32xf32, #tpu.memory_space<vmem>>, vector<16x32xf32>,
    return
  }
}

</mosaic_0001>

<bundles_post_ra>
// kernel: tpu_custom_call.1
= control target key start
LH: loop header
LB: loop body
LE: loop exit
PB: predicated region body
PF: predicated region fallthrough
CT: control target
= control target key end

     0   :  { %9 = vsyncpa [#allocation3], 0  ;;  %s2034_s0 = inlined_call_operand.hbm [shape: bf16[4,16,16], index: 0, kind: input, shape index: {}]   ;;  %s2035_s1 = inlined_call_operand.hbm [shape: f32[16,32], index: 1, kind: input, shape index: {}]   ;;  %s2036_s2 = inlined_call_operand.hbm [shape: bf16[3,4,32,32], index: 2, kind: input, shape index: {}]   ;;  %s2037_s3 = inlined_call_operand.vmem [shape: f32[3,1,32], index: 3, kind: input, shape index: {}]   ;;  %s2038_s4 = inlined_call_operand.hbm [shape: f32[16,32], index: 4, kind: output, shape index: {}]  }
   0x1   :  { %10 = vsyncpa [#allocation6], 0 }
   0x2   :  { %11 = vsyncpa [#allocation4], 0  ;;  %s1820_s15 = smov [#allocation5]  }
   0x3   :  { %s29_s16 = sshll.u32 %s1820_s15, 4  ;;  %s30_s16 = int_to_ptr.vmem [resolvable:$true] %s29_s16 }
   0x4   :  { %s1742_s17 = scalar_lea.vmem %s30_s16, 256  ;;  %p1747_p1 = scmp.lt.s32.totalorder %s30_s16, %s30_s16 }
   0x5   :  { %p1743_p0 = scmp.ne.s32.totalorder %s30_s16, %s1742_s17  ;;  %p1748_p2 = scmp.lt.s32.totalorder %s1742_s17, %s1742_s17 }
   0x7   :  { %p1749_p3 = por %p1748_p2, %p1747_p1 }
   0x9   :  { %p1750_p4 = pnand %p1749_p3, %p1743_p0 }
   0xb   :  { %1753 = shalt.err (!%p1750_p4)
}
   0xc   :  { %s1821_s18 = smov 128   ;;  %s1822_s19 = smov 8  }
   0xd   :  { %35 = dma.hbm_to_vmem [thread:$0]  %s2035_s1, 256, %s30_s16, [#allocation6], %s1821_s18, %s1821_s18, %s1822_s19  }
   0xe   :  { %s1823_s22 = smov [#allocation2]  }
   0xf   :  { %s17_s23 = sshll.u32 %s1823_s22, 4  ;;  %s18_s23 = int_to_ptr.vmem [resolvable:$true] %s17_s23 }
  0x10   :  { %s1762_s24 = scalar_lea.vmem %s18_s23, 512  ;;  %p1767_p6 = scmp.lt.s32.totalorder %s18_s23, %s18_s23 }
  0x11   :  { %p1763_p5 = scmp.ne.s32.totalorder %s18_s23, %s1762_s24  ;;  %p1768_p7 = scmp.lt.s32.totalorder %s1762_s24, %s1762_s24 }
  0x13   :  { %p1769_p8 = por %p1768_p7, %p1767_p6 }
  0x15   :  { %p1770_p9 = pnand %p1769_p8, %p1763_p5 }
  0x17   :  { %1773 = shalt.err (!%p1770_p9)
}
  0x18   :  { %s1824_s25 = smov 64   ;;  %s1825_s26 = smov 4  }
  0x19   :  { %23 = dma.hbm_to_vmem [thread:$0]  %s2034_s0, 512, %s18_s23, [#allocation3], %s1824_s25, %s1824_s25, %s1825_s26  }
  0x1a   :  { %s1826_s29 = smov [#allocation7]  }
  0x1b   :  { %s41_s30 = sshll.u32 %s1826_s29, 4  ;;  %s42_s30 = int_to_ptr.vmem [resolvable:$true] %s41_s30 }
  0x1c   :  { %s1782_s1 = scalar_lea.vmem %s42_s30, 3072  ;;  %p1787_p11 = scmp.lt.s32.totalorder %s42_s30, %s42_s30 }
  0x1d   :  { %p1783_p10 = scmp.ne.s32.totalorder %s42_s30, %s1782_s1  ;;  %p1788_p12 = scmp.lt.s32.totalorder %s1782_s1, %s1782_s1 }
  0x1f   :  { %p1789_p13 = por %p1788_p12, %p1787_p11 }
  0x21   :  { %p1790_p0 = pnand %p1789_p13, %p1783_p10 }
  0x23   :  { %1793 = shalt.err (!%p1790_p0)
}
  0x24   :  { %47 = dma.hbm_to_vmem [thread:$0]  %s2036_s2, 3072, %s42_s30, [#allocation6], %s1824_s25, %s1824_s25, %s1825_s26  }
  0x25   :  { %1814 = dma.done.wait [#allocation3], 512  }
  0x26   :  { %1815 = vsyncadd [#allocation3], 4294966784 }
  0x27   :  { %1816 = dma.done.wait [#allocation6], 3328  }
  0x28   :  { %1817 = vsyncadd [#allocation6], 4294963968  ;;  %v1827_v0 = vmov 0.0   ;;  %vm1828_vm0 = vmmov 0   ;;  %v1706_v1 = vld [vmem:[#allocation7 + $0x8] sm:$0xff]   ;;  %v1707_v2 = vld [vmem:[#allocation7] sm:$0xff]  }
  0x29   :  { %1528 = vmatprep.subr.bf16.mxu0 %v1827_v0  ;;  %1532 = vmatprep.mubr.msk.bf16.mxu0 %vm1828_vm0, %v1827_v0  ;;  %v1873_v3 = vld [vmem:[#allocation5] sm:$0xff]  ;;  %v1875_v4 = vld [vmem:[#allocation5 + $0x8] sm:$0xff]  ;;  %vm86_vm1 = vcmask 261120   ;;  %vm139_vm2 = vcmask 130048   ;;  %v1711_v14 = vld [vmem:[#allocation7 + $0x28] sm:$0xff]  }
  0x2a   :  { %1536 = vmatprep.subr.bf16.mxu1 %v1827_v0  ;;  %1538 = vmatprep.mubr.msk.bf16.mxu1 %vm1828_vm0, %v1827_v0  ;;  %v62_v5 = vpack.c.bf16 %v1875_v4, %v1873_v3  ;;  %v1884_v11 = vld [vmem:[#allocation2] sm:$0xff]   ;;  %v1709_v12 = vld [vmem:[#allocation7 + $0x18] sm:$0xff]   ;;  %v1712_v15 = vld [vmem:[#allocation7 + $0x20] sm:$0xff]  }
  0x2b   :  { %1529 = vmatpush3.bf16.msra.mxu0 %v1706_v1  ;;  %v1710_v13 = vld [vmem:[#allocation7 + $0x10] sm:$0xff]   ;;  %v1713_v16 = vld [vmem:[#allocation7 + $0x38] sm:$0xff]   ;;  %v1913_v33 = vld [vmem:[#allocation2 + $0x10] sm:$0xff]  }
  0x2c   :  { %1530 = vmatprep.subr.bf16.mxu0 %v1827_v0  ;;  %v1714_v17 = vld [vmem:[#allocation7 + $0x30] sm:$0xff]   ;;  %v1906_v27 = vld [vmem:[#allocation2 + $0x8] sm:$0xff]   ;;  %v1920_v39 = vld [vmem:[#allocation2 + $0x18] sm:$0xff]  }
  0x2d   :  { %v1718_v40 = vld [vmem:[#allocation7 + $0x48] sm:$0xff]   ;;  %v1719_v41 = vld [vmem:[#allocation7 + $0x40] sm:$0xff]   ;;  %v1411_v46 = vld [vmem:[%s2037_s3] ss:$0 sm:$0xff] }
  0x2f   :  { %1531 = vmatpush3.bf16.msra.mxu0 %v1707_v2 }
  0x30   :  { %1550 = vmatprep.subr.bf16.mxu0 %v1827_v0 }
  0x32   :  { %1533 = vmatmul.mubr.msk.bf16.vlgmr.msra.gmra.mxu0 %vm86_vm1, %v62_v5 }
  0x33   :  { %1552 = vmatprep.mubr.msk.bf16.mxu0 %vm1828_vm0, %v1827_v0 }
  0xf2   :  { %v124_v6 = vpop.f32.mrf.mxu0 }
  0xf4   :  { %v1534_v7 = vpop.f32.mrf.mxu0 }
  0xf6   :  { %v127_v8 = vpop.f32.mrf.mxu0 }
  0xf7   :  { %v133_v9 = vpack.c.bf16 %v127_v8, %v124_v6  ;;  %v1720_v6 = vld [vmem:[#allocation7 + $0x58] sm:$0xff]   ;;  %v1721_v8 = vld [vmem:[#allocation7 + $0x50] sm:$0xff]  }
  0xf8   :  { %v1535_v10 = vpop.f32.mrf.mxu0 }
  0xf9   :  { %1537 = vmatpush3.bf16.msra.mxu1 %v133_v9  ;;  %v1722_v9 = vld [vmem:[#allocation7 + $0x68] sm:$0xff]   ;;  %v1723_v10 = vld [vmem:[#allocation7 + $0x60] sm:$0xff]  }
  0xfa   :  { %1542 = vmatprep.subr.bf16.mxu1 %v1827_v0 }
  0xfc   :  { %1539 = vmatmul.mubr.msk.bf16.vlgmr.msra.gmra.mxu1 %vm139_vm2, %v1884_v11 }
  0xfd   :  { %1543 = vmatpush3.bf16.msra.mxu1 %v1709_v12  ;;  %1546 = vmatprep.mubr.msk.bf16.mxu1 %vm1828_vm0, %v1827_v0  ;;  %v1724_v12 = vld [vmem:[#allocation7 + $0x78] sm:$0xff]  }
  0xfe   :  { %1544 = vmatprep.subr.bf16.mxu1 %v1827_v0 }
 0x101   :  { %1545 = vmatpush3.bf16.msra.mxu1 %v1710_v13  ;;  %v1725_v13 = vld [vmem:[#allocation7 + $0x70] sm:$0xff]  }
 0x102   :  { %1556 = vmatprep.subr.bf16.mxu1 %v1827_v0 }
 0x104   :  { %1547 = vmatmul.mubr.msk.bf16.vlgmr.msra.gmra.mxu1 %vm86_vm1, %v62_v5 }
 0x105   :  { %1557 = vmatpush3.bf16.msra.mxu1 %v1711_v14  ;;  %1560 = vmatprep.mubr.msk.bf16.mxu1 %vm1828_vm0, %v1827_v0 }
 0x106   :  { %1558 = vmatprep.subr.bf16.mxu1 %v1827_v0 }
 0x109   :  { %1559 = vmatpush3.bf16.msra.mxu1 %v1712_v15 }
 0x10a   :  { %1570 = vmatprep.subr.bf16.mxu1 %v1827_v0 }
 0x10c   :  { %1561 = vmatmul.mubr.msk.bf16.vlgmr.msra.gmra.mxu1 %vm86_vm1, %v62_v5 }
 0x10d   :  { %1571 = vmatpush3.bf16.msra.mxu1 %v1713_v16  ;;  %1574 = vmatprep.mubr.msk.bf16.mxu1 %vm1828_vm0, %v1827_v0 }
 0x10e   :  { %1572 = vmatprep.subr.bf16.mxu1 %v1827_v0 }
 0x111   :  { %1573 = vmatpush3.bf16.msra.mxu1 %v1714_v17 }
 0x112   :  { %1584 = vmatprep.subr.bf16.mxu1 %v1827_v0 }
 0x114   :  { %1575 = vmatmul.mubr.msk.bf16.vlgmr.msra.gmra.mxu1 %vm86_vm1, %v62_v5 }
 0x115   :  { %1588 = vmatprep.mubr.msk.bf16.mxu1 %vm1828_vm0, %v1827_v0  ;;  %1585 = vmatpush3.bf16.msra.mxu1 %v1718_v40 }
 0x116   :  { %1586 = vmatprep.subr.bf16.mxu1 %v1827_v0 }
 0x119   :  { %1587 = vmatpush3.bf16.msra.mxu1 %v1719_v41 }
 0x11a   :  { %1598 = vmatprep.subr.bf16.mxu1 %v1827_v0 }
 0x1bc   :  { %v177_v18 = vpop.f32.mrf.mxu1 }
 0x1bd   :  { %v184_v49 = vadd.f32 %v1411_v46, %v177_v18 }
 0x1be   :  { %v1540_v19 = vpop.f32.mrf.mxu1 }
 0x1c0   :  { %v180_v20 = vpop.f32.mrf.mxu1 }
 0x1c1   :  { %v185_v53 = vadd.f32 %v1411_v46, %v180_v20 }
 0x1c2   :  { %v1541_v21 = vpop.f32.mrf.mxu1 }
 0x1c4   :  { %v237_v22 = vpop.f32.mrf.mxu1 }
 0x1c6   :  { %v1548_v23 = vpop.f32.mrf.mxu1 }
 0x1c8   :  { %v240_v24 = vpop.f32.mrf.mxu1 }
 0x1c9   :  { %v247_v25 = vpack.c.bf16 %v240_v24, %v237_v22 }
 0x1ca   :  { %v1549_v26 = vpop.f32.mrf.mxu1 }
 0x1cb   :  { %1551 = vmatpush3.bf16.msra.mxu0 %v247_v25 }
 0x1cc   :  { %v350_v28 = vpop.f32.mrf.mxu1  ;;  %1564 = vmatprep.subr.bf16.mxu0 %v1827_v0 }
 0x1ce   :  { %1553 = vmatmul.mubr.msk.bf16.vlgmr.msra.gmra.mxu0 %vm139_vm2, %v1906_v27  ;;  %v1562_v29 = vpop.f32.mrf.mxu1 }
 0x1cf   :  { %1566 = vmatprep.mubr.msk.bf16.mxu0 %vm1828_vm0, %v1827_v0 }
 0x1d0   :  { %v353_v30 = vpop.f32.mrf.mxu1 }
 0x1d1   :  { %v360_v31 = vpack.c.bf16 %v353_v30, %v350_v28 }
 0x1d2   :  { %v1563_v32 = vpop.f32.mrf.mxu1 }
 0x1d3   :  { %1565 = vmatpush3.bf16.msra.mxu0 %v360_v31 }
 0x1d4   :  { %v463_v34 = vpop.f32.mrf.mxu1  ;;  %1578 = vmatprep.subr.bf16.mxu0 %v1827_v0 }
 0x1d6   :  { %1567 = vmatmul.mubr.msk.bf16.vlgmr.msra.gmra.mxu0 %vm139_vm2, %v1913_v33  ;;  %v1576_v35 = vpop.f32.mrf.mxu1 }
 0x1d7   :  { %1580 = vmatprep.mubr.msk.bf16.mxu0 %vm1828_vm0, %v1827_v0 }
 0x1d8   :  { %v466_v36 = vpop.f32.mrf.mxu1 }
 0x1d9   :  { %v473_v37 = vpack.c.bf16 %v466_v36, %v463_v34  ;;  %v1726_v36 = vld [vmem:[#allocation7 + $0x88] sm:$0xff]  }
 0x1da   :  { %v1577_v38 = vpop.f32.mrf.mxu1 }
 0x1db   :  { %1579 = vmatpush3.bf16.msra.mxu0 %v473_v37  ;;  %v1727_v37 = vld [vmem:[#allocation7 + $0x80] sm:$0xff]  }
 0x1dc   :  { %1592 = vmatprep.subr.bf16.mxu0 %v1827_v0 }
 0x1de   :  { %1581 = vmatmul.mubr.msk.bf16.vlgmr.msra.gmra.mxu0 %vm139_vm2, %v1920_v39 }
 0x1df   :  { %1594 = vmatprep.mubr.msk.bf16.mxu0 %vm1828_vm0, %v1827_v0 }
 0x28e   :  { %v290_v42 = vpop.f32.mrf.mxu0 }
 0x28f   :  { %v297_v51 = vadd.f32 %v290_v42, %v184_v49 }
 0x290   :  { %v1554_v43 = vpop.f32.mrf.mxu0 }
 0x292   :  { %v293_v44 = vpop.f32.mrf.mxu0 }
 0x293   :  { %v298_v56 = vadd.f32 %v293_v44, %v185_v53 }
 0x294   :  { %v1555_v45 = vpop.f32.mrf.mxu0 }
 0x296   :  { %v403_v47 = vpop.f32.mrf.mxu0 }
 0x297   :  { %v410_v54 = vadd.f32 %v403_v47, %v297_v51  ;;  %v1433_v47 = vld [vmem:[%s2037_s3 + $0x1] ss:$0 sm:$0xff] }
 0x298   :  { %v1568_v48 = vpop.f32.mrf.mxu0 }
 0x29a   :  { %v406_v50 = vpop.f32.mrf.mxu0 }
 0x29b   :  { %v411_v59 = vadd.f32 %v406_v50, %v298_v56 }
 0x29c   :  { %v1569_v52 = vpop.f32.mrf.mxu0 }
 0x29e   :  { %v516_v55 = vpop.f32.mrf.mxu0 }
 0x29f   :  { %v523_v57 = vadd.f32 %v516_v55, %v410_v54 }
 0x2a0   :  { %v1582_v58 = vpop.f32.mrf.mxu0 }
 0x2a1   :  { %v527_v61 = vmul.f32 0.01, %v523_v57  ;;  %vm525_vm3 = vcmp.gt.f32.partialorder %v523_v57, 0.0 }
 0x2a2   :  { %v519_v60 = vpop.f32.mrf.mxu0 }
 0x2a3   :  { %v524_v62 = vadd.f32 %v519_v60, %v411_v59  ;;  %v1932_v2 = vsel %vm525_vm3, %v523_v57, %v527_v61 }
 0x2a4   :  { %v1583_v63 = vpop.f32.mrf.mxu0 }
 0x2a5   :  { %vm526_vm4 = vcmp.gt.f32.partialorder %v524_v62, 0.0  ;;  %v528_v1 = vmul.f32 0.01, %v524_v62 }
 0x2a7   :  { %v1934_v5 = vsel %vm526_vm4, %v524_v62, %v528_v1  ;;  %v531_v62 = vadd.f32 %v1932_v2, %v1873_v3  ;;  %v1729_v3 = vld [vmem:[#allocation7 + $0x90] sm:$0xff]  }
 0x2a8   :  { %v533_v7 = vpack.c.bf16 %v1934_v5, %v1932_v2  ;;  %v1730_v2 = vld [vmem:[#allocation7 + $0xa8] sm:$0xff]  }
 0x2aa   :  { %1589 = vmatmul.mubr.msk.bf16.vlgmr.msra.gmra.mxu1 %vm86_vm1, %v533_v7 }
 0x2ab   :  { %1599 = vmatpush3.bf16.msra.mxu1 %v1720_v6  ;;  %1602 = vmatprep.mubr.msk.bf16.mxu1 %vm1828_vm0, %v1827_v0 }
 0x2ac   :  { %1600 = vmatprep.subr.bf16.mxu1 %v1827_v0 }
 0x2af   :  { %1601 = vmatpush3.bf16.msra.mxu1 %v1721_v8 }
 0x2b0   :  { %1612 = vmatprep.subr.bf16.mxu1 %v1827_v0 }
 0x2b2   :  { %1603 = vmatmul.mubr.msk.bf16.vlgmr.msra.gmra.mxu1 %vm86_vm1, %v533_v7 }
 0x2b3   :  { %1613 = vmatpush3.bf16.msra.mxu1 %v1722_v9  ;;  %1616 = vmatprep.mubr.msk.bf16.mxu1 %vm1828_vm0, %v1827_v0 }
 0x2b4   :  { %1614 = vmatprep.subr.bf16.mxu1 %v1827_v0 }
 0x2b7   :  { %1615 = vmatpush3.bf16.msra.mxu1 %v1723_v10  ;;  %v532_v10 = vadd.f32 %v1934_v5, %v1875_v4  ;;  %v1731_v4 = vld [vmem:[#allocation7 + $0xa0] sm:$0xff]   ;;  %v1732_v5 = vld [vmem:[#allocation7 + $0xb8] sm:$0xff]  }
 0x2b8   :  { %1626 = vmatprep.subr.bf16.mxu1 %v1827_v0 }
 0x2ba   :  { %1617 = vmatmul.mubr.msk.bf16.vlgmr.msra.gmra.mxu1 %vm86_vm1, %v533_v7 }
 0x2bb   :  { %1627 = vmatpush3.bf16.msra.mxu1 %v1724_v12  ;;  %1630 = vmatprep.mubr.msk.bf16.mxu1 %vm1828_vm0, %v1827_v0 }
 0x2bc   :  { %1628 = vmatprep.subr.bf16.mxu1 %v1827_v0 }
 0x2bf   :  { %1629 = vmatpush3.bf16.msra.mxu1 %v1725_v13  ;;  %v1728_v13 = vld [vmem:[#allocation7 + $0x98] sm:$0xff]  }
 0x2c0   :  { %1640 = vmatprep.subr.bf16.mxu1 %v1827_v0 }
 0x2c2   :  { %1631 = vmatmul.mubr.msk.bf16.vlgmr.msra.gmra.mxu1 %vm86_vm1, %v533_v7 }
 0x2c3   :  { %1644 = vmatprep.mubr.msk.bf16.mxu1 %vm1828_vm0, %v1827_v0  ;;  %1641 = vmatpush3.bf16.msra.mxu1 %v1726_v36 }
 0x2c4   :  { %1642 = vmatprep.subr.bf16.mxu1 %v1827_v0 }
 0x2c7   :  { %1643 = vmatpush3.bf16.msra.mxu1 %v1727_v37 }
 0x2c8   :  { %1654 = vmatprep.subr.bf16.mxu1 %v1827_v0 }
 0x36a   :  { %v596_v14 = vpop.f32.mrf.mxu1 }
 0x36c   :  { %v1590_v15 = vpop.f32.mrf.mxu1 }
 0x36e   :  { %v599_v16 = vpop.f32.mrf.mxu1 }
 0x36f   :  { %v603_v17 = vpack.c.bf16 %v599_v16, %v596_v14  ;;  %v1733_v16 = vld [vmem:[#allocation7 + $0xb0] sm:$0xff]  }
 0x370   :  { %v1591_v18 = vpop.f32.mrf.mxu1 }
 0x371   :  { %1593 = vmatpush3.bf16.msra.mxu0 %v603_v17 }
 0x372   :  { %v698_v19 = vpop.f32.mrf.mxu1  ;;  %1606 = vmatprep.subr.bf16.mxu0 %v1827_v0 }
 0x374   :  { %1595 = vmatmul.mubr.msk.bf16.vlgmr.msra.gmra.mxu0 %vm139_vm2, %v1884_v11  ;;  %v1604_v20 = vpop.f32.mrf.mxu1 }
 0x375   :  { %1608 = vmatprep.mubr.msk.bf16.mxu0 %vm1828_vm0, %v1827_v0 }
 0x376   :  { %v701_v21 = vpop.f32.mrf.mxu1 }
 0x377   :  { %v705_v22 = vpack.c.bf16 %v701_v21, %v698_v19 }
 0x378   :  { %v1605_v23 = vpop.f32.mrf.mxu1 }
 0x379   :  { %1607 = vmatpush3.bf16.msra.mxu0 %v705_v22 }
 0x37a   :  { %v800_v24 = vpop.f32.mrf.mxu1  ;;  %1620 = vmatprep.subr.bf16.mxu0 %v1827_v0 }
 0x37c   :  { %1609 = vmatmul.mubr.msk.bf16.vlgmr.msra.gmra.mxu0 %vm139_vm2, %v1906_v27  ;;  %v1618_v25 = vpop.f32.mrf.mxu1 }
 0x37d   :  { %1622 = vmatprep.mubr.msk.bf16.mxu0 %vm1828_vm0, %v1827_v0 }
 0x37e   :  { %v803_v26 = vpop.f32.mrf.mxu1 }
 0x37f   :  { %v807_v28 = vpack.c.bf16 %v803_v26, %v800_v24 }
 0x380   :  { %v1619_v29 = vpop.f32.mrf.mxu1 }
 0x381   :  { %1621 = vmatpush3.bf16.msra.mxu0 %v807_v28 }
 0x382   :  { %v902_v30 = vpop.f32.mrf.mxu1  ;;  %1634 = vmatprep.subr.bf16.mxu0 %v1827_v0 }
 0x384   :  { %1623 = vmatmul.mubr.msk.bf16.vlgmr.msra.gmra.mxu0 %vm139_vm2, %v1913_v33  ;;  %v1632_v31 = vpop.f32.mrf.mxu1 }
 0x385   :  { %1636 = vmatprep.mubr.msk.bf16.mxu0 %vm1828_vm0, %v1827_v0 }
 0x386   :  { %v905_v32 = vpop.f32.mrf.mxu1 }
 0x387   :  { %v909_v34 = vpack.c.bf16 %v905_v32, %v902_v30 }
 0x388   :  { %v1633_v35 = vpop.f32.mrf.mxu1 }
 0x389   :  { %1635 = vmatpush3.bf16.msra.mxu0 %v909_v34 }
 0x38a   :  { %1648 = vmatprep.subr.bf16.mxu0 %v1827_v0 }
 0x38c   :  { %1637 = vmatmul.mubr.msk.bf16.vlgmr.msra.gmra.mxu0 %vm139_vm2, %v1920_v39 }
 0x38d   :  { %1650 = vmatprep.mubr.msk.bf16.mxu0 %vm1828_vm0, %v1827_v0 }
 0x434   :  { %v638_v38 = vpop.f32.mrf.mxu0 }
 0x435   :  { %v645_v50 = vadd.f32 %v1433_v47, %v638_v38 }
 0x436   :  { %v1596_v40 = vpop.f32.mrf.mxu0 }
 0x438   :  { %v641_v41 = vpop.f32.mrf.mxu0 }
 0x439   :  { %v646_v54 = vadd.f32 %v1433_v47, %v641_v41 }
 0x43a   :  { %v1597_v42 = vpop.f32.mrf.mxu0 }
 0x43c   :  { %v740_v43 = vpop.f32.mrf.mxu0 }
 0x43d   :  { %v747_v52 = vadd.f32 %v740_v43, %v645_v50 }
 0x43e   :  { %v1610_v44 = vpop.f32.mrf.mxu0 }
 0x440   :  { %v743_v45 = vpop.f32.mrf.mxu0 }
 0x441   :  { %v748_v57 = vadd.f32 %v743_v45, %v646_v54 }
 0x442   :  { %v1611_v46 = vpop.f32.mrf.mxu0 }
 0x444   :  { %v842_v48 = vpop.f32.mrf.mxu0 }
 0x445   :  { %v849_v55 = vadd.f32 %v842_v48, %v747_v52 }
 0x446   :  { %v1624_v49 = vpop.f32.mrf.mxu0 }
 0x448   :  { %v845_v51 = vpop.f32.mrf.mxu0 }
 0x449   :  { %v850_v60 = vadd.f32 %v845_v51, %v748_v57 }
 0x44a   :  { %v1625_v53 = vpop.f32.mrf.mxu0 }
 0x44c   :  { %v944_v56 = vpop.f32.mrf.mxu0 }
 0x44d   :  { %v951_v58 = vadd.f32 %v944_v56, %v849_v55 }
 0x44e   :  { %v1638_v59 = vpop.f32.mrf.mxu0 }
 0x44f   :  { %vm953_vm5 = vcmp.gt.f32.partialorder %v951_v58, 0.0  ;;  %v955_v61 = vmul.f32 0.01, %v951_v58 }
 0x450   :  { %v947_v63 = vpop.f32.mrf.mxu0 }
 0x451   :  { %v957_v1 = vsel %vm953_vm5, %v951_v58, %v955_v61  ;;  %v952_v6 = vadd.f32 %v947_v63, %v850_v60 }
 0x452   :  { %v1983_v7 = vadd.f32 %v957_v1, %v531_v62  ;;  %v1639_v8 = vpop.f32.mrf.mxu0 }
 0x453   :  { %vm954_vm6 = vcmp.gt.f32.partialorder %v952_v6, 0.0  ;;  %v956_v9 = vmul.f32 0.01, %v952_v6 }
 0x455   :  { %v958_v12 = vsel %vm954_vm6, %v952_v6, %v956_v9 }
 0x456   :  { %v1987_v14 = vadd.f32 %v958_v12, %v532_v10  ;;  %v961_v15 = vpack.c.bf16 %v958_v12, %v957_v1 }
 0x458   :  { %1645 = vmatmul.mubr.msk.bf16.vlgmr.msra.gmra.mxu1 %vm86_vm1, %v961_v15 }
 0x459   :  { %1655 = vmatpush3.bf16.msra.mxu1 %v1728_v13  ;;  %1658 = vmatprep.mubr.msk.bf16.mxu1 %vm1828_vm0, %v1827_v0 }
 0x45a   :  { %1656 = vmatprep.subr.bf16.mxu1 %v1827_v0 }
 0x45d   :  { %1657 = vmatpush3.bf16.msra.mxu1 %v1729_v3 }
 0x45e   :  { %1668 = vmatprep.subr.bf16.mxu1 %v1827_v0 }
 0x460   :  { %1659 = vmatmul.mubr.msk.bf16.vlgmr.msra.gmra.mxu1 %vm86_vm1, %v961_v15 }
 0x461   :  { %1669 = vmatpush3.bf16.msra.mxu1 %v1730_v2  ;;  %1672 = vmatprep.mubr.msk.bf16.mxu1 %vm1828_vm0, %v1827_v0 }
 0x462   :  { %1670 = vmatprep.subr.bf16.mxu1 %v1827_v0 }
 0x465   :  { %1671 = vmatpush3.bf16.msra.mxu1 %v1731_v4 }
 0x466   :  { %1682 = vmatprep.subr.bf16.mxu1 %v1827_v0 }
 0x468   :  { %1673 = vmatmul.mubr.msk.bf16.vlgmr.msra.gmra.mxu1 %vm86_vm1, %v961_v15 }
 0x469   :  { %1683 = vmatpush3.bf16.msra.mxu1 %v1732_v5  ;;  %1686 = vmatprep.mubr.msk.bf16.mxu1 %vm1828_vm0, %v1827_v0 }
 0x46a   :  { %1684 = vmatprep.subr.bf16.mxu1 %v1827_v0 }
 0x46d   :  { %1685 = vmatpush3.bf16.msra.mxu1 %v1733_v16 }
 0x470   :  { %1687 = vmatmul.mubr.msk.bf16.vlgmr.msra.gmra.mxu1 %vm86_vm1, %v961_v15 }
 0x518   :  { %v1024_v17 = vpop.f32.mrf.mxu1 }
 0x51a   :  { %v1646_v18 = vpop.f32.mrf.mxu1 }
 0x51c   :  { %v1027_v19 = vpop.f32.mrf.mxu1 }
 0x51d   :  { %v1031_v20 = vpack.c.bf16 %v1027_v19, %v1024_v17 }
 0x51e   :  { %v1647_v21 = vpop.f32.mrf.mxu1 }
 0x51f   :  { %1649 = vmatpush3.bf16.msra.mxu0 %v1031_v20 }
 0x520   :  { %v1126_v22 = vpop.f32.mrf.mxu1  ;;  %1662 = vmatprep.subr.bf16.mxu0 %v1827_v0 }
 0x522   :  { %1651 = vmatmul.mubr.msk.bf16.vlgmr.msra.gmra.mxu0 %vm139_vm2, %v1884_v11  ;;  %v1660_v23 = vpop.f32.mrf.mxu1 }
 0x523   :  { %1664 = vmatprep.mubr.msk.bf16.mxu0 %vm1828_vm0, %v1827_v0 }
 0x524   :  { %v1129_v24 = vpop.f32.mrf.mxu1 }
 0x525   :  { %v1133_v25 = vpack.c.bf16 %v1129_v24, %v1126_v22 }
 0x526   :  { %v1661_v26 = vpop.f32.mrf.mxu1 }
 0x527   :  { %1663 = vmatpush3.bf16.msra.mxu0 %v1133_v25 }
 0x528   :  { %v1228_v28 = vpop.f32.mrf.mxu1  ;;  %1676 = vmatprep.subr.bf16.mxu0 %v1827_v0 }
 0x52a   :  { %1665 = vmatmul.mubr.msk.bf16.vlgmr.msra.gmra.mxu0 %vm139_vm2, %v1906_v27  ;;  %v1674_v29 = vpop.f32.mrf.mxu1 }
 0x52b   :  { %1678 = vmatprep.mubr.msk.bf16.mxu0 %vm1828_vm0, %v1827_v0 }
 0x52c   :  { %v1231_v30 = vpop.f32.mrf.mxu1 }
 0x52d   :  { %v1235_v11 = vpack.c.bf16 %v1231_v30, %v1228_v28 }
 0x52e   :  { %v1675_v31 = vpop.f32.mrf.mxu1 }
 0x52f   :  { %1677 = vmatpush3.bf16.msra.mxu0 %v1235_v11 }
 0x530   :  { %v1330_v32 = vpop.f32.mrf.mxu1  ;;  %1690 = vmatprep.subr.bf16.mxu0 %v1827_v0 }
 0x532   :  { %1679 = vmatmul.mubr.msk.bf16.vlgmr.msra.gmra.mxu0 %vm139_vm2, %v1913_v33  ;;  %v1688_v34 = vpop.f32.mrf.mxu1  ;;  %v1451_v33 = vld [vmem:[%s2037_s3 + $0x2] ss:$0 sm:$0xff]  ;;  %s1829_s3 = smov [#allocation8]  }
 0x533   :  { %1692 = vmatprep.mubr.msk.bf16.mxu0 %vm1828_vm0, %v1827_v0  ;;  %s1398_s11 = sshll.u32 %s1829_s3, 4  ;;  %s1399_s11 = int_to_ptr.vmem [resolvable:$true] %s1398_s11 }
 0x534   :  { %v1333_v35 = vpop.f32.mrf.mxu1  ;;  %s1794_s12 = scalar_lea.vmem %s1399_s11, 256  ;;  %p1799_p2 = scmp.lt.s32.totalorder %s1399_s11, %s1399_s11 }
 0x535   :  { %v1337_v27 = vpack.c.bf16 %v1333_v35, %v1330_v32  ;;  %p1795_p1 = scmp.ne.s32.totalorder %s1399_s11, %s1794_s12  ;;  %p1800_p3 = scmp.lt.s32.totalorder %s1794_s12, %s1794_s12 }
 0x536   :  { %v1689_v36 = vpop.f32.mrf.mxu1 }
 0x537   :  { %1691 = vmatpush3.bf16.msra.mxu0 %v1337_v27  ;;  %p1801_p4 = por %p1800_p3, %p1799_p2 }
 0x539   :  { %p1802_p5 = pnand %p1801_p4, %p1795_p1 }
 0x53a   :  { %1693 = vmatmul.mubr.msk.bf16.vlgmr.msra.gmra.mxu0 %vm139_vm2, %v1920_v39 }
 0x5e2   :  { %v1066_v37 = vpop.f32.mrf.mxu0 }
 0x5e3   :  { %v1073_v47 = vadd.f32 %v1451_v33, %v1066_v37 }
 0x5e4   :  { %v1652_v38 = vpop.f32.mrf.mxu0 }
 0x5e6   :  { %v1069_v40 = vpop.f32.mrf.mxu0 }
 0x5e7   :  { %v1074_v51 = vadd.f32 %v1451_v33, %v1069_v40 }
 0x5e8   :  { %v1653_v41 = vpop.f32.mrf.mxu0 }
 0x5ea   :  { %v1168_v42 = vpop.f32.mrf.mxu0 }
 0x5eb   :  { %v1175_v49 = vadd.f32 %v1168_v42, %v1073_v47 }
 0x5ec   :  { %v1666_v43 = vpop.f32.mrf.mxu0 }
 0x5ee   :  { %v1171_v44 = vpop.f32.mrf.mxu0 }
 0x5ef   :  { %v1176_v53 = vadd.f32 %v1171_v44, %v1074_v51 }
 0x5f0   :  { %v1667_v45 = vpop.f32.mrf.mxu0 }
 0x5f2   :  { %v1270_v0 = vpop.f32.mrf.mxu0 }
 0x5f3   :  { %v1277_v39 = vadd.f32 %v1270_v0, %v1175_v49 }
 0x5f4   :  { %v1680_v46 = vpop.f32.mrf.mxu0 }
 0x5f6   :  { %v1273_v48 = vpop.f32.mrf.mxu0 }
 0x5f7   :  { %v1278_v56 = vadd.f32 %v1273_v48, %v1176_v53 }
 0x5f8   :  { %v1681_v50 = vpop.f32.mrf.mxu0 }
 0x5fa   :  { %v1372_v52 = vpop.f32.mrf.mxu0 }
 0x5fb   :  { %v1379_v54 = vadd.f32 %v1372_v52, %v1277_v39 }
 0x5fc   :  { %v1694_v55 = vpop.f32.mrf.mxu0 }
 0x5fd   :  { %vm1381_vm7 = vcmp.gt.f32.partialorder %v1379_v54, 0.0  ;;  %v1383_v57 = vmul.f32 0.01, %v1379_v54 }
 0x5fe   :  { %v1375_v58 = vpop.f32.mrf.mxu0 }
 0x5ff   :  { %v1385_v59 = vsel %vm1381_vm7, %v1379_v54, %v1383_v57  ;;  %v1380_v60 = vadd.f32 %v1375_v58, %v1278_v56 }
 0x600   :  { %v1387_v61 = vadd.f32 %v1385_v59, %v1983_v7  ;;  %v1695_v62 = vpop.f32.mrf.mxu0 }
 0x601   :  { %vm1382_vm8 = vcmp.gt.f32.partialorder %v1380_v60, 0.0  ;;  %v1384_v63 = vmul.f32 0.01, %v1380_v60 }
 0x602   :  { %v1389_v1 = vmul.f32 0.25, %v1387_v61 }
 0x603   :  { %v1386_v6 = vsel %vm1382_vm8, %v1380_v60, %v1384_v63 }
 0x604   :  { %1391 = vst.msk [vmem:[#allocation8] sm:$0xff] %vm86_vm1, %v1389_v1  ;;  %v1388_v8 = vadd.f32 %v1386_v6, %v1987_v14 }
 0x606   :  { %v1390_v9 = vmul.f32 0.25, %v1388_v8 }
 0x608   :  { %1392 = vst.msk [vmem:[#allocation8 + $0x8] sm:$0xff] %vm86_vm1, %v1390_v9 }
 0x609   :  { %1805 = shalt.err (!%p1802_p5)
}
 0x60a   :  { %1404 = dma.vmem_to_hbm [thread:$0]  %s1399_s11, 256, %s2038_s4, [#allocation4], %s1821_s18, %s1821_s18, %s1822_s19  }
 0x60b   :  { %1818 = dma.done.wait [#allocation4], 256  }
 0x60c   :  { %1819 = vsyncadd [#allocation4], 4294967040 }
 0x60d   :  { %1408 = vsyncpa [#allocation3], 1 }
 0x60e   :  { %1409 = vsyncpa [#allocation6], 1 }
 0x60f   :  { %1410 = vsyncpa [#allocation4], 1 }

</bundles_post_ra>
